<compile_context>
chip_gen: v7x
topology: tpu7x:2x2x1
jax: 0.10.0
libtpu: 0.0.40
codegen_flags: <defaults>
</compile_context>

<pallas_src>
import functools
import inspect

import jax
import jax.numpy as jnp
from jax.experimental import pallas as pl
from jax.experimental.pallas import tpu as pltpu


def _round_up(n: int, m: int) -> int:
    return ((n + m - 1) // m) * m


def _round_down(n: int, m: int) -> int:
    return (n // m) * m


def _cdiv(a: int, b: int) -> int:
    return (a + b - 1) // b


# pipeline_mode=pl.Buffered(1) lets constant-index (resident) operands be
# single-buffered, halving the VMEM they hold.  Guard on API availability so
# the kernel still runs (just double-buffered) on older jax versions.
_HAS_SINGLE_BUFFER = (
    hasattr(pl, "Buffered")
    and "pipeline_mode" in inspect.signature(pl.BlockSpec).parameters
)


def _resident_spec(block_shape, index_map):
    """BlockSpec for an operand whose block never changes across the grid."""
    if _HAS_SINGLE_BUFFER:
        return pl.BlockSpec(block_shape, index_map, pipeline_mode=pl.Buffered(1))
    return pl.BlockSpec(block_shape, index_map)


def _vmem_budget():
    """(vmem_limit_bytes, tile_budget_bytes) derived per TPU generation."""
    cap = 64 * 1024 * 1024  # conservative fallback: v7x per-TensorCore VMEM
    try:
        info = pltpu.get_tpu_info()
        cap = int(getattr(info, "vmem_capacity_bytes", cap) or cap)
    except Exception:
        pass
    vmem_limit = int(cap * 0.80)                  # ~102 MiB on 128 MiB chips, ~51 MiB on v7x
    tile_budget = vmem_limit - 8 * 1024 * 1024    # headroom for compiler-internal scratch
    return vmem_limit, tile_budget


def _derive_tm(M: int, tm_cap: int, tm_user) -> int:
    if tm_user is not None:
        tm = int(tm_user)
    else:
        tm = min(
            1024,
            tm_cap,
            _round_up(M, 8),                       # never larger than (rounded-up) M
            max(8, _round_up(_cdiv(M, 4), 8)),     # >=2 (ideally 4) grid steps -> megacore
        )
    if tm >= 256:
        tm = _round_down(tm, 256)   # fill v6e/v7x 2x256x256 MXUs (also 128-aligned for v5e)
    elif tm >= 128:
        tm = _round_down(tm, 128)
    else:
        tm = max(8, _round_down(tm, 8))
    return int(tm)


# --------------------------- kernels ---------------------------------------


def _resident_kernel(x_ref, w_ref, b_ref, o_ref):
    """One (TM, H) row tile of: out = x @ W + b + x, W fully resident in VMEM."""
    x = x_ref[...]
    y = jnp.dot(x.astype(w_ref.dtype), w_ref[...],
                preferred_element_type=jnp.float32)
    # Epilogue in f32; residual uses the ORIGINAL-precision x (not re-rounded).
    o_ref[...] = (y + b_ref[...].astype(jnp.float32)
                  + x.astype(jnp.float32)).astype(o_ref.dtype)


def _ksplit_kernel(xk_ref, xr_ref, w_ref, b_ref, o_ref, acc_ref):
    """K-split variant: W streamed in (TK, H) slabs, f32 accumulator scratch."""
    k = pl.program_id(1)

    @pl.when(k == 0)
    def _():
        acc_ref[...] = jnp.zeros_like(acc_ref)

    acc_ref[...] += jnp.dot(xk_ref[...].astype(w_ref.dtype), w_ref[...],
                            preferred_element_type=jnp.float32)

    @pl.when(k == pl.num_programs(1) - 1)
    def _():
        o_ref[...] = (acc_ref[...] + b_ref[...].astype(jnp.float32)
                      + xr_ref[...].astype(jnp.float32)).astype(o_ref.dtype)


# --------------------------- wrapper ----------------------------------------


def residual_add_linear(x, w, b, *, tm=None, tk=None, force_k_split=False):
    """ResidualAdd(nn.Linear(H, H)):  out = x @ w + b + x  (residual fused in).

    x: (..., H) float.  w: (H, H) — w.dtype selects the MXU input dtype, so
    pre-cast w to bfloat16 ONCE outside the hot loop for the fast path; the
    default float32 w preserves PyTorch float32 Linear numerics.
    b: (H,) or (1, H).
    """
    orig_shape = x.shape
    H = int(orig_shape[-1])
    M = 1
    for d in orig_shape[:-1]:
        M *= int(d)

    x2d = x.reshape(M, H)
    b2d = jnp.asarray(b, jnp.float32).reshape(1, H)

    x_item = jnp.dtype(x.dtype).itemsize
    w_item = jnp.dtype(w.dtype).itemsize
    vmem_limit, tile_budget = _vmem_budget()

    # ---------------- resident-W plan ---------------------------------------
    w_buffers = 1 if _HAS_SINGLE_BUFFER else 2
    resident = w_buffers * H * H * w_item + w_buffers * H * 4      # W + bias
    per_row = (2 * x_item       # x row tile (double-buffered)
               + 2 * 4          # out row tile (double-buffered)
               + 4              # f32 MXU result tile
               + 4              # f32 epilogue temporaries / lhs cast
               ) * H
    tm_cap = (tile_budget - resident) // per_row if resident < tile_budget else 0

    use_ksplit = bool(force_k_split) or tm_cap < min(64, _round_up(M, 8))

    if not use_ksplit:
        TM = _derive_tm(M, tm_cap, tm)
        grid_m = _cdiv(M, TM)
        out2d = pl.pallas_call(
            _resident_kernel,
            out_shape=jax.ShapeDtypeStruct((M, H), x.dtype),
            grid=(grid_m,),
            in_specs=[
                pl.BlockSpec((TM, H), lambda i: (i, 0)),      # x: pipelined row tiles
                _resident_spec((H, H), lambda i: (0, 0)),     # W: resident, single-buffered
                _resident_spec((1, H), lambda i: (0, 0)),     # b: resident, single-buffered
            ],
            out_specs=pl.BlockSpec((TM, H), lambda i: (i, 0)),
            compiler_params=pltpu.CompilerParams(
                dimension_semantics=("parallel",),            # shard rows across TCs
                vmem_limit_bytes=vmem_limit,
            ),
        )(x2d, w, b2d)
        return out2d.reshape(orig_shape)

    # ---------------- K-split plan (W streamed in (TK, H) slabs) ------------
    TK = None
    for cand in ([int(tk)] if tk else []) + [512, 256, 128]:
        if cand % 128 == 0 and H % cand == 0:
            TK = cand
            break
    if TK is None:
        # Rare: large H that is not a multiple of 128.  Zero-pad only the
        # contraction (K) dim; zero rows of W contribute nothing, so results
        # stay exact.  (Output / residual columns stay unpadded.)
        Hk = _round_up(H, 128)
        TK = 128
        xk2d = jnp.pad(x2d, ((0, 0), (0, Hk - H)))
        w_k = jnp.pad(w, ((0, Hk - H), (0, 0)))
    else:
        Hk, xk2d, w_k = H, x2d, w
    nk = Hk // TK

    resident2 = 2 * TK * H * w_item + H * 4          # streamed W slab (dbl-buf) + bias
    per_row2 = (2 * TK * x_item      # K-chunked x tile (double-buffered)
                + 2 * H * x_item     # full x row tile for the residual (double-buffered)
                + 2 * H * 4          # out row tile (double-buffered)
                + H * 4              # f32 accumulator scratch
                + H * 4)             # f32 MXU result / epilogue temporaries
    tm_cap2 = (tile_budget - resident2) // per_row2 if resident2 < tile_budget else 8
    TM = _derive_tm(M, max(8, tm_cap2), tm)
    # TODO(synk): if even (TM=8, TK=128) exceeds the VMEM budget (H ~ 100k+),
    # also split the output (N) dimension.

    out2d = pl.pallas_call(
        _ksplit_kernel,
        out_shape=jax.ShapeDtypeStruct((M, H), x.dtype),
        grid=(_cdiv(M, TM), nk),
        in_specs=[
            pl.BlockSpec((TM, TK), lambda m, k: (m, k)),     # x, K-chunked (MXU lhs)
            pl.BlockSpec((TM, H), lambda m, k: (m, 0)),      # x, full row (residual add)
            pl.BlockSpec((TK, H), lambda m, k: (k, 0)),      # W slab, streamed over k
            _resident_spec((1, H), lambda m, k: (0, 0)),     # bias, resident
        ],
        out_specs=pl.BlockSpec((TM, H), lambda m, k: (m, 0)),
        scratch_shapes=[pltpu.VMEM((TM, H), jnp.float32)],
        compiler_params=pltpu.CompilerParams(
            dimension_semantics=("parallel", "arbitrary"),
            vmem_limit_bytes=vmem_limit,
        ),
    )(xk2d, x2d, w_k, b2d)
    return out2d.reshape(orig_shape)


if __name__ == "__main__":
    B, S, H = 2, 8, 32

    key = jax.random.PRNGKey(0)
    kx, kw, kb = jax.random.split(key, 3)

    x = jax.random.normal(kx, (B, S, H), dtype=jnp.float32)
    # Deterministic "fn" parameters (Linear(H, H)), Kaiming-uniform-ish scale.
    scale = 1.0 / jnp.sqrt(jnp.float32(H))
    w = jax.random.uniform(kw, (H, H), minval=-scale, maxval=scale, dtype=jnp.float32)
    b = jax.random.uniform(kb, (H,), minval=-scale, maxval=scale, dtype=jnp.float32)

    ref = x @ w + b + x

    # 1) Default f32 path — preserves PyTorch float32 Linear numerics.
    out = jax.jit(residual_add_linear)(x, w, b)
    jax.block_until_ready(out)
    assert out.shape == x.shape
    assert jnp.allclose(out, ref, atol=1e-5, rtol=1e-5)

    # 2) bf16-MXU fast path: weight pre-cast ONCE outside the hot loop
    #    (no per-call cast/pad inside the jitted wrapper).
    w_bf16 = w.astype(jnp.bfloat16)
    out_bf16 = jax.jit(residual_add_linear)(x, w_bf16, b)
    jax.block_until_ready(out_bf16)
    ref_bf16 = (jnp.dot(x.astype(jnp.bfloat16), w_bf16,
                        preferred_element_type=jnp.float32) + b + x)
    assert jnp.allclose(out_bf16, ref_bf16, atol=1e-4, rtol=1e-4)

    # 3) K-split (streamed-W, f32 accumulator) path smoke test.
    H2 = 256
    k2 = jax.random.split(jax.random.PRNGKey(1), 3)
    x2 = jax.random.normal(k2[0], (B, S, H2), dtype=jnp.float32)
    w2 = jax.random.normal(k2[1], (H2, H2), dtype=jnp.float32) / jnp.sqrt(jnp.float32(H2))
    b2 = jax.random.normal(k2[2], (H2,), dtype=jnp.float32)
    fn_ks = jax.jit(functools.partial(residual_add_linear, tk=128, force_k_split=True))
    out2 = fn_ks(x2, w2, b2)
    jax.block_until_ready(out2)
    ref2 = x2 @ w2 + b2 + x2
    assert jnp.allclose(out2, ref2, atol=1e-4, rtol=1e-4)

    print("KERNEL_OK")
</pallas_src>

<mosaic_0001>
module attributes {stable_mosaic.version = 11 : i64} {
  func.func @_resident_kernel(%arg0: i32, %arg1: memref<8x32xf32, #tpu.memory_space<vmem>>, %arg2: memref<32x32xf32, #tpu.memory_space<vmem>>, %arg3: memref<1x32xf32, #tpu.memory_space<vmem>>, %arg4: memref<8x32xf32, #tpu.memory_space<vmem>>) attributes {dimension_semantics = [#tpu.dimension_semantics<parallel>], iteration_bounds = array<i64: 2>, scalar_prefetch = 0 : i64, scratch_operands = 0 : i64, tpu.core_type = #tpu.core_type<tc>, window_params = [{transform_indices = @transform_0, window_bounds = array<i64: 8, 32>}, {pipeline_mode = #tpu.pipeline_mode<synchronous>, transform_indices = @transform_1, window_bounds = array<i64: 32, 32>}, {pipeline_mode = #tpu.pipeline_mode<synchronous>, transform_indices = @transform_2, window_bounds = array<i64: 1, 32>}, {transform_indices = @transform_3, window_bounds = array<i64: 8, 32>}]} {
    %c0 = arith.constant 0 : index
    %c0_0 = arith.constant 0 : index
    %0 = vector.load %arg1[%c0, %c0_0] : memref<8x32xf32, #tpu.memory_space<vmem>>, vector<8x32xf32>
    %c0_1 = arith.constant 0 : index
    %c0_2 = arith.constant 0 : index
    %1 = vector.load %arg2[%c0_1, %c0_2] : memref<32x32xf32, #tpu.memory_space<vmem>>, vector<32x32xf32>
    %cst = arith.constant dense<0.000000e+00> : vector<8x32xf32>
    %2 = tpu.matmul %0, %1, %cst {dimension_numbers = #tpu.dot_dimension_numbers<[1], [0], [0], [1], [0, 0, 1, 1], [], []>} : vector<8x32xf32>, vector<32x32xf32>, vector<8x32xf32> -> vector<8x32xf32>
    %c0_3 = arith.constant 0 : index
    %c0_4 = arith.constant 0 : index
    %3 = vector.load %arg3[%c0_3, %c0_4] : memref<1x32xf32, #tpu.memory_space<vmem>>, vector<1x32xf32>
    %4 = vector.broadcast %3 : vector<1x32xf32> to vector<8x32xf32>
    %5 = arith.addf %2, %4 : vector<8x32xf32>
    %6 = arith.addf %5, %0 : vector<8x32xf32>
    %c0_5 = arith.constant 0 : index
    %c0_6 = arith.constant 0 : index
    %7 = vector.load %arg4[%c0_5, %c0_6] : memref<8x32xf32, #tpu.memory_space<vmem>>, vector<8x32xf32>
    tpu.vector_store %arg4[%c0_5, %c0_6], %6 {strides = array<i32>} : memref<8x32xf32, #tpu.memory_space<vmem>>, vector<8x32xf32>,
    return
  }
  func.func @transform_0(%arg0: i32) -> (i32, i32) {
    %c0_i32 = arith.constant 0 : i32
    %c0_i32_0 = arith.constant 0 : i32
    return %arg0, %c0_i32 : i32, i32
  }
  func.func @transform_1(%arg0: i32) -> (i32, i32) {
    %c0_i32 = arith.constant 0 : i32
    %c0_i32_0 = arith.constant 0 : i32
    %c0_i32_1 = arith.constant 0 : i32
    return %c0_i32, %c0_i32_0 : i32, i32
  }
  func.func @transform_2(%arg0: i32) -> (i32, i32) {
    %c0_i32 = arith.constant 0 : i32
    %c0_i32_0 = arith.constant 0 : i32
    %c0_i32_1 = arith.constant 0 : i32
    return %c0_i32, %c0_i32_0 : i32, i32
  }
  func.func @transform_3(%arg0: i32) -> (i32, i32) {
    %c0_i32 = arith.constant 0 : i32
    %c0_i32_0 = arith.constant 0 : i32
    return %arg0, %c0_i32 : i32, i32
  }
}

</mosaic_0001>

<bundles_post_ra>
// kernel: residual_add_linear.1
= control target key start
LH: loop header
LB: loop body
LE: loop exit
PB: predicated region body
PF: predicated region fallthrough
CT: control target
= control target key end

     0   :  { %8 = vsyncpa [#allocation3], 0  ;;  %s840_s0 = inlined_call_operand.hbm [shape: f32[16,32], index: 0, kind: input, shape index: {}]   ;;  %s841_s1 = inlined_call_operand.hbm [shape: f32[32,32], index: 1, kind: input, shape index: {}]   ;;  %s842_s2 = inlined_call_operand.vmem [shape: f32[1,32], index: 2, kind: input, shape index: {}]   ;;  %s843_s3 = inlined_call_operand.hbm [shape: f32[16,32], index: 3, kind: output, shape index: {}]  }
   0x1   :  { %10 = vsyncpa [#allocation3 + $0x1], 0 }
   0x2   :  { %11 = vsyncpa [#allocation6], 0 }
   0x3   :  { %12 = vsyncpa [#allocation4], 0 }
   0x4   :  { %14 = vsyncpa [#allocation4 + $0x1], 0  ;;  %s641_s12 = smov 0   ;;  %s643_s13 = smov 0  }
   0x5   :  { %s645_s14 = smov 0   ;;  %s647_s15 = smov 0  }
   0x6 LB: > { %s662_s16 = sadd.s32 4294967295, %s611_s15   ;;  %s383_s17 = sadd.s32 4294967294, %s611_s15   ;;  %s611_s15 = sphi %s647_s15, %s863_s15   ;;  %s607_s14 = sphi %s645_s14, %s862_s14   ;;  %s603_s13 = sphi %s643_s13, %s861_s13   ;;  %s599_s12 = sphi %s641_s12, %s860_s12  }
   0x7   : > { %p40_p0 = scmp.ne.s32.totalorder %s603_s13, %s599_s12  ;;  %p844_p1 = scmp.eq.s32.totalorder %s662_s16, 0 }
   0x8   : > { %p112_p3 = scmp.eq.s32.totalorder %s383_s17, 1  ;;  %p384_p5 = scmp.ge.s32.totalorder %s611_s15, 1 }
   0x9   : > { %p671_p4 = por %p844_p1, %p40_p0  ;;  %p119_p7 = scmp.lt.s32.totalorder %s611_s15, 3 }
   0xa   : > { %p676_p6 = por %p112_p3, %p40_p0  ;;  %s613_s21 = smov [#allocation5]  }
   0xb   : > { %s847_s18 = scalar_select %p671_p4, 1, 0 }
   0xc   : > { %s848_s19 = scalar_select %p676_p6, 1, 0 }
   0xd   : > { %p681_p8 = pnand %p384_p5, %p119_p7  ;;  %s131_s22 = sshll.u32 %s613_s21, 4  ;;  %s685_s22 = int_to_ptr.vmem [resolvable:$true] %s131_s22 }
   0xe   : > { %s697_s24 = sadd.s32 1, %s611_s15   ;;  %s27_s25 = sadd.s32 1, %s607_s14 }
   0xf   : > { %s849_s20 = scalar_select %p681_p8, 1, 0 }
  0x10   : > { %p429_p9 = pneg %p681_p8  ;;  %s24_s26 = ssub.s32 %s611_s15, %s697_s24 }
  0x11   : > { %s483_s29 = scalar_lea.hbm %s841_s1, 512 }
  0x12   : > { %p692_p11 = pnand %p429_p9, %p844_p1  ;;  %p484_p12 = scmp.ne.s32.totalorder %s841_s1, %s483_s29 }
  0x13   : > { %p490_p5 = scmp.lt.u32.totalorder %s483_s29, %s841_s1 }
  0x14   : > { %p485_p13 = pneg %p692_p11 }
  0x16   : > { %p486_p0 = pnand %p485_p13, %p484_p12 }
  0x18   : > { %p487_p3 = pneg %p486_p0 }
  0x1a   : > { %p492_p7 = pnand %p490_p5, %p487_p3 }
  0x1c   : > { %495 = shalt.err (!%p492_p7)
}
  0x1d   : > { %s496_s7 = scalar_lea.vmem %s685_s22, 512  ;;  %p504_p2 = scmp.lt.s32.totalorder %s685_s22, %s685_s22 }
  0x1e   : > { %p497_p9 = scmp.ne.s32.totalorder %s685_s22, %s496_s7  ;;  %p505_p6 = scmp.lt.s32.totalorder %s496_s7, %s496_s7 }
  0x20   : > { %p499_p10 = pnand %p497_p9, %p485_p13  ;;  %p506_p4 = por %p505_p6, %p504_p2 }
  0x22   : > { %p500_p1 = pneg %p499_p10 }
  0x24   : > { %p507_p8 = pnand %p506_p4, %p500_p1 }
  0x26   : > { %510 = shalt.err (!%p507_p8)
}
  0x27   : > { %s614_s8 = smov 128   ;;  %s615_s9 = smov 8  }
  0x28   : > { %432 = dma.hbm_to_vmem [thread:$0]  (!%p692_p11), %s841_s1, 512, %s685_s22, [#allocation6], %s614_s8, %s614_s8, %s615_s9  }
  0x29   : > { %p25_p2 = scmp.eq.s32.totalorder %s24_s26, 0  ;;  %p34_p1 = scmp.ne.s32.totalorder %s607_s14, %s603_s13 }
  0x2a   : > { %p35_p4 = scmp.eq.s32.totalorder %s611_s15, 0  ;;  %p442_p6 = scmp.lt.s32.totalorder %s611_s15, 2 }
  0x2b   : > { %s728_s17 = scalar_select %p25_p2, %s607_s14, %s27_s25  }
  0x2c   : > { %p36_p8 = por %p35_p4, %p34_p1  ;;  %p851_p10 = scmp.eq.s32.totalorder %s662_s16, 1 }
  0x2d   : > { %s148_s27 = sand.u32 1, %s607_s14   ;;  %s388_s28 = sshll.u32 %s611_s15, 7 }
  0x2e   : > { %p732_p12 = por %p851_p10, %p34_p1  ;;  %s387_s29 = sshll.u32 %s148_s27, 3 }
  0x2f   : > { %s741_s4 = scalar_lea.hbm %s840_s0, %s388_s28  ;;  %s152_s22 = scalar_lea.vmem [#allocation2], %s387_s29 }
  0x30   : > { %s159_s25 = sshll.u32 %s152_s22, 4  ;;  %p743_p11 = pnand %p442_p6, %p36_p8  ;;  %s747_s25 = int_to_ptr.vmem [resolvable:$true] %s159_s25 }
  0x31   : > { %s149_s5 = scalar_lea.sflag [#allocation3], %s148_s27  ;;  %s511_s6 = scalar_lea.hbm %s741_s4, 128 }
  0x32   : > { %p512_p13 = scmp.ne.s32.totalorder %s741_s4, %s511_s6  ;;  %p513_p0 = pneg %p743_p11 }
  0x33   : > { %s516_s9 = scalar_lea.hbm %s840_s0, 256  ;;  %p517_p7 = scmp.lt.u32.totalorder %s741_s4, %s840_s0 }
  0x34   : > { %p514_p3 = pnand %p513_p0, %p512_p13  ;;  %p518_p9 = scmp.lt.u32.totalorder %s516_s9, %s511_s6 }
  0x35   : > { %p520_p1 = scmp.lt.u32.totalorder %s511_s6, %s741_s4 }
  0x36   : > { %p515_p5 = pneg %p514_p3  ;;  %p519_p2 = por %p518_p9, %p517_p7 }
  0x38   : > { %p521_p4 = por %p520_p1, %p519_p2 }
  0x3a   : > { %p522_p6 = pnand %p521_p4, %p515_p5 }
  0x3c   : > { %525 = shalt.err (!%p522_p6)
}
  0x3d   : > { %s526_s27 = scalar_lea.vmem %s747_s25, 128  ;;  %s616_s28 = smov [#allocation2]  }
  0x3e   : > { %p527_p8 = scmp.ne.s32.totalorder %s747_s25, %s526_s27  ;;  %s531_s29 = sshll.u32 %s616_s28, 4  ;;  %s532_s29 = int_to_ptr.vmem [resolvable:$false] %s531_s29 }
  0x3f   : > { %s533_s23 = scalar_lea.vmem %s532_s29, 256  ;;  %p534_p3 = scmp.lt.s32.totalorder %s747_s25, %s532_s29 }
  0x40   : > { %p529_p10 = pnand %p527_p8, %p513_p0  ;;  %p535_p7 = scmp.lt.s32.totalorder %s533_s23, %s526_s27 }
  0x42   : > { %p530_p13 = pneg %p529_p10  ;;  %p536_p9 = por %p535_p7, %p534_p3 }
  0x44   : > { %p537_p2 = pnand %p536_p9, %p530_p13 }
  0x46   : > { %540 = shalt.err (!%p537_p2)
}
  0x47   : > { %436 = dma.hbm_to_vmem [thread:$0]  (!%p743_p11), %s741_s4, 128, %s747_s25, %s149_s5  }
  0x48   : > { %p854_p5 = scmp.ne.s32.totalorder %s849_s20, 0 }
  0x49   : > { %s777_s30 = sand.u32 (!%p854_p5), 1, %s603_s13   ;;  %p855_p0 = scmp.ne.s32.totalorder (!%p854_p5), %s847_s18, 0 }
  0x4a   : > { %168 = sbr.rel (%p854_p5) target bundleno = 325 (0x145), region = 32  ;;  %s390_s22 = sshll.u32 (!%p854_p5), %s777_s30, 3 }
  0x4b   : > { %s171_s6 = scalar_lea.sflag (!%p854_p5), [#allocation3], %s777_s30  ;;  %s174_s7 = scalar_lea.vmem (!%p854_p5), [#allocation2], %s390_s22 }
  0x51   : > { %586 = dma.done.wait (%p855_p0), %s171_s6, 128  }
  0x52   : > { %588 = vsyncadd (%p855_p0), %s171_s6, 4294967168  ;;  %p856_p1 = scmp.eq.s32.totalorder %s662_s16, 0 }
  0x54   : > { %590 = dma.done.wait (%p856_p1), [#allocation6], 512   ;;  %p857_p11 = pmov %p856_p1 }
  0x55   : > { %v617_v0 = vmov 0.0|0.0   ;;  %vm618_vm0 = vmmov 0   ;;  %v619_v1 = vmov 0.0   ;;  %v202_v2 = vld [vmem:[#allocation5] sm:$0xff]  ;;  %v203_v3 = vld [vmem:[#allocation5 + $0x8] sm:$0xff]  ;;  %v204_v4 = vld [vmem:[#allocation5 + $0x10] sm:$0xff] }
  0x56   : > { %592 = vsyncadd (%p857_p11), [#allocation6], 4294966784  ;;  %415 = vmatprep.subr.bf16.mxu0 %v617_v0  ;;  %412 = vmatprep.mubr.msk.f32.mxu0 %vm618_vm0, %v619_v1  ;;  %v416_v5 = vpack.c.bf16 %v203_v3, %v202_v2  ;;  %v205_v6 = vld [vmem:[#allocation5 + $0x18] sm:$0xff]  ;;  %vm213_vm1 = vcmask 261120   ;;  %v393_v9 = vld [vmem:[%s842_s2] ss:$0 sm:$0xff] }
  0x57   : > { %v419_v7 = vpack.c.bf16 %v205_v6, %v204_v4  ;;  %v201_v8 = vld [vmem:[%s174_s7] sm:$0xff]  ;;  %s396_s4 = sshll.u32 %s662_s16, 7  ;;  %s200_s25 = scalar_lea.vmem [#allocation7], %s390_s22 }
  0x58   : > { %417 = vmatpush3.bf16.msra.mxu0 %v416_v5  ;;  %s303_s26 = sshll.u32 %s200_s25, 4  ;;  %s796_s9 = scalar_lea.hbm %s843_s3, %s396_s4  ;;  %s798_s26 = int_to_ptr.vmem [resolvable:$true] %s303_s26 }
  0x59   : > { %418 = vmatprep.subr.bf16.mxu0 %v617_v0  ;;  %s290_s10 = scalar_lea.sflag [#allocation4], %s777_s30  ;;  %s541_s11 = scalar_lea.vmem %s798_s26, 128 }
  0x5a   : > { %p542_p4 = scmp.ne.s32.totalorder %s798_s26, %s541_s11  ;;  %s620_s16 = smov [#allocation7]  }
  0x5b   : > { %s545_s27 = sshll.u32 %s620_s16, 4  ;;  %s546_s27 = int_to_ptr.vmem [resolvable:$false] %s545_s27 }
  0x5c   : > { %420 = vmatpush3.bf16.msra.mxu0 %v419_v7  ;;  %p543_p6 = pnand %p542_p4, %p732_p12  ;;  %s547_s28 = scalar_lea.vmem %s546_s27, 256 }
  0x5d   : > { %p548_p10 = scmp.lt.s32.totalorder %s798_s26, %s546_s27  ;;  %p549_p13 = scmp.lt.s32.totalorder %s547_s28, %s541_s11 }
  0x5e   : > { %p544_p8 = pneg %p543_p6 }
  0x5f   : > { %413 = vmatmul.mubr.msk.f32.vlgmr.msra.gmra.mrb[0].mxu0 %vm213_vm1, %v201_v8  ;;  %p550_p3 = por %p549_p13, %p548_p10 }
  0x61   : > { %p551_p7 = pnand %p550_p3, %p544_p8 }
 0x132   : > { %v283_v10 = vpop.f32.mrb[0].mxu0 }
 0x133   : > { %v284_v11 = vadd.f32 %v393_v9, %v283_v10  ;;  %v414_v12 = vpop.f32.mrb[1].mxu0 }
 0x135   : > { %v287_v13 = vadd.f32 %v284_v11, %v201_v8 }
 0x137   : > { %288 = vst.msk [vmem:[%s200_s25] sm:$0xff] %vm213_vm1, %v287_v13 }
 0x138   : > { %554 = shalt.err (!%p551_p7)
}
 0x139   : > { %s555_s29 = scalar_lea.hbm %s796_s9, 128  ;;  %s559_s22 = scalar_lea.hbm %s843_s3, 256 }
 0x13a   : > { %p556_p9 = scmp.ne.s32.totalorder %s796_s9, %s555_s29  ;;  %p560_p0 = scmp.lt.u32.totalorder %s796_s9, %s843_s3 }
 0x13b   : > { %p561_p1 = scmp.lt.u32.totalorder %s559_s22, %s555_s29  ;;  %p563_p4 = scmp.lt.u32.totalorder %s555_s29, %s796_s9 }
 0x13c   : > { %p557_p2 = pnand %p556_p9, %p732_p12 }
 0x13d   : > { %p562_p11 = por %p561_p1, %p560_p0 }
 0x13e   : > { %p558_p5 = pneg %p557_p2 }
 0x13f   : > { %p564_p6 = por %p563_p4, %p562_p11 }
 0x141   : > { %p565_p8 = pnand %p564_p6, %p558_p5 }
 0x143   : > { %568 = shalt.err (!%p565_p8)
}
 0x144   : > { %427 = dma.vmem_to_hbm [thread:$0]  (%p732_p12), %s798_s26, 128, %s796_s9, %s290_s10  }
 0x145 PF: > { %s315_s18 = sand.u32 1, %s599_s12   ;;  %p858_p10 = scmp.ne.s32.totalorder %s848_s19, 0 }
 0x146   : > { %p859_p13 = scmp.ge.s32.totalorder %s611_s15, 2  ;;  %s316_s20 = scalar_lea.sflag [#allocation4], %s315_s18 }
 0x148   : > { %p438_p3 = pnand %p859_p13, %p858_p10 }
 0x14a   : > { %594 = dma.done.wait (!%p438_p3), %s316_s20, 128  }
 0x14b   : > { %596 = vsyncadd (!%p438_p3), %s316_s20, 4294967168  ;;  %p17_p7 = scmp.ge.s32.totalorder %s697_s24, 4   ;;  %s860_s12 = smov %s603_s13 }
 0x14c   : > { %s861_s13 = smov %s607_s14  ;;  %s862_s14 = smov %s728_s17 }
 0x14d   : > { %s863_s15 = smov %s697_s24  ;;  %19 = sbr.rel (!%p17_p7) target bundleno = 6 (0x6), region = 81 }
 0x154   :  { %321 = vsyncpa [#allocation3], 1 }
 0x155   :  { %323 = vsyncpa [#allocation3 + $0x1], 1 }
 0x156   :  { %324 = vsyncpa [#allocation6], 1 }
 0x157   :  { %325 = vsyncpa [#allocation4], 1 }
 0x158   :  { %327 = vsyncpa [#allocation4 + $0x1], 1 }

</bundles_post_ra>
